<compile_context>
chip_gen: v7x
topology: tpu7x:2x2x1
jax: 0.10.0
libtpu: 0.0.40
codegen_flags: <defaults>
</compile_context>

<pallas_src>
import functools

import jax
import jax.numpy as jnp
import numpy as np
from jax.experimental import pallas as pl
from jax.experimental.pallas import tpu as pltpu


def _pow_static(q, gamma):
    """q ** gamma; non-negative integer gamma is unrolled to plain multiplies."""
    if float(gamma) == float(int(gamma)) and int(gamma) >= 0:
        g = int(gamma)
        if g == 0:
            return jnp.ones_like(q)
        out = q
        for _ in range(g - 1):
            out = out * q
        return out
    return q ** jnp.float32(gamma)


def _focal_loss_kernel(x_ref, t_ref, o_ref, *, gamma, n_pixels):
    j = pl.program_id(1)
    tile_p = x_ref.shape[-1]

    x = x_ref[0].astype(jnp.float32)      # (C, tile_p): classes on sublanes, pixels on lanes
    t = t_ref[0]                          # (1, tile_p) int32 targets

    # Tail mask for the last pixel tile (grid uses cdiv).  Sanitize BEFORE
    # exp/max so garbage columns of an edge block cannot produce Inf/NaN.
    lane = jax.lax.broadcasted_iota(jnp.int32, (1, tile_p), 1)
    valid = (j * tile_p + lane) < n_pixels               # (1, tile_p) bool
    x = jnp.where(valid, x, 0.0)

    # Numerically-stable log-softmax over the class (sublane) axis, evaluated
    # only at the target class.
    m = jnp.max(x, axis=0, keepdims=True)                           # (1, tile_p)
    shifted = x - m                                                 # (C, tile_p)
    denom = jnp.sum(jnp.exp(shifted), axis=0, keepdims=True)        # (1, tile_p)

    cls = jax.lax.broadcasted_iota(jnp.int32, shifted.shape, 0)     # (C, tile_p)
    onehot = (cls == t).astype(jnp.float32)                         # (C, tile_p)
    xt_shifted = jnp.sum(shifted * onehot, axis=0, keepdims=True)   # (1, tile_p)

    logp_t = xt_shifted - jnp.log(denom)                            # (1, tile_p)
    p_t = jnp.exp(logp_t)
    focal = _pow_static(1.0 - p_t, gamma) * logp_t

    contrib = jnp.where(valid, -focal, 0.0)                         # (1, tile_p)

    # Per-lane partial sums -> lane-dense (1, 1, 128) output block.
    if tile_p % 128 == 0:
        lanes = jnp.sum(contrib.reshape(tile_p // 128, 128), axis=0)
        o_ref[...] = lanes.reshape(1, 1, 128)
    else:  # only reachable when H*W < 128
        s = jnp.sum(contrib) * jnp.float32(1.0 / 128.0)
        o_ref[...] = jnp.full((1, 1, 128), s, jnp.float32)


def focal_loss_2d(inputs, targets, gamma=2, *,
                  target_block_bytes=2 * 1024 * 1024,
                  max_tile_pixels=65536):
    """inputs: (N, C, H, W) float; targets: (N, H, W) int. Returns scalar loss."""
    N, C, H, W = inputs.shape
    P = H * W
    M = N * P

    # NCHW-native: pure reshapes only (no transpose, no pad copy).  Inputs keep
    # their original dtype over the DMA and are cast to f32 in-kernel.
    x = inputs.reshape(N, C, P)
    t = targets.reshape(N, 1, P).astype(jnp.int32)

    # Lane-dense pixel tiles: multiples of 128, sized so the double-buffered
    # x block plus per-class intermediates stay well inside scoped VMEM.
    elem = jnp.dtype(inputs.dtype).itemsize
    desired = (target_block_bytes // (C * elem)) // 128 * 128
    desired = max(128, min(desired, max_tile_pixels))
    if P <= desired:
        tile_p = P if (P % 128 == 0 or P < 128) else (P // 128) * 128
    else:
        tile_p = desired
    grid_p = pl.cdiv(P, tile_p)

    kernel = functools.partial(_focal_loss_kernel, gamma=float(gamma), n_pixels=P)

    partials = pl.pallas_call(
        kernel,
        out_shape=jax.ShapeDtypeStruct((N, grid_p, 128), jnp.float32),
        grid_spec=pltpu.PrefetchScalarGridSpec(
            num_scalar_prefetch=0,
            grid=(N, grid_p),
            in_specs=[
                pl.BlockSpec((1, C, tile_p), lambda n, j: (n, 0, j)),
                pl.BlockSpec((1, 1, tile_p), lambda n, j: (n, 0, j)),
            ],
            out_specs=pl.BlockSpec((1, 1, 128), lambda n, j: (n, j, 0)),
        ),
        compiler_params=pltpu.CompilerParams(
            dimension_semantics=("parallel", "parallel"),
            vmem_limit_bytes=32 * 1024 * 1024,
        ),
    )(x, t)

    # reduction='mean' with weight=None -> mean over all N*H*W pixels.
    return jnp.sum(partials) / jnp.float32(M)


def _reference_focal_loss(inputs, targets, gamma=2):
    x = jnp.asarray(inputs, jnp.float32)
    p = jax.nn.softmax(x, axis=1)
    logp = jax.nn.log_softmax(x, axis=1)
    mod = (1.0 - p) ** gamma * logp                       # (N, C, H, W)
    onehot = jax.nn.one_hot(targets, x.shape[1], axis=1)  # (N, C, H, W)
    picked = jnp.sum(mod * onehot, axis=1)                # (N, H, W)
    return -jnp.mean(picked)


if __name__ == "__main__":
    key = jax.random.PRNGKey(0)
    k1, k2 = jax.random.split(key)

    N, C, H, W = 2, 4, 16, 16
    inputs = jax.random.normal(k1, (N, C, H, W), dtype=jnp.float32)
    targets = jax.random.randint(k2, (N, H, W), 0, C, dtype=jnp.int32)

    loss = focal_loss_2d(inputs, targets, gamma=2)
    loss = jax.block_until_ready(loss)

    ref = jax.block_until_ready(_reference_focal_loss(inputs, targets, gamma=2))
    assert np.allclose(np.asarray(loss), np.asarray(ref), rtol=1e-5, atol=1e-5), (
        loss, ref)

    print("KERNEL_OK")
</pallas_src>

<mosaic_0001>
module attributes {stable_mosaic.version = 11 : i64} {
  func.func @_focal_loss_kernel(%arg0: i32, %arg1: i32, %arg2: memref<1x4x256xf32, #tpu.memory_space<vmem>>, %arg3: memref<1x1x256xi32, #tpu.memory_space<vmem>>, %arg4: memref<1x1x128xf32, #tpu.memory_space<vmem>>) attributes {dimension_semantics = [#tpu.dimension_semantics<parallel>, #tpu.dimension_semantics<parallel>], iteration_bounds = array<i64: 2, 1>, scalar_prefetch = 0 : i64, scratch_operands = 0 : i64, tpu.core_type = #tpu.core_type<tc>, window_params = [{transform_indices = @transform_0, window_bounds = array<i64: 1, 4, 256>}, {transform_indices = @transform_1, window_bounds = array<i64: 1, 1, 256>}, {transform_indices = @transform_2, window_bounds = array<i64: 1, 1, 128>}]} {
    %c0 = arith.constant 0 : index
    %c0_0 = arith.constant 0 : index
    %c0_1 = arith.constant 0 : index
    %0 = vector.load %arg2[%c0, %c0_0, %c0_1] : memref<1x4x256xf32, #tpu.memory_space<vmem>>, vector<1x4x256xf32>
    %1 = vector.shape_cast %0 : vector<1x4x256xf32> to vector<4x256xf32>
    %c0_2 = arith.constant 0 : index
    %c0_3 = arith.constant 0 : index
    %c0_4 = arith.constant 0 : index
    %2 = vector.load %arg3[%c0_2, %c0_3, %c0_4] : memref<1x1x256xi32, #tpu.memory_space<vmem>>, vector<1x1x256xi32>
    %3 = vector.shape_cast %2 : vector<1x1x256xi32> to vector<1x256xi32>
    %4 = tpu.iota {dimensions = array<i32: 1>} : vector<1x256xi32>
    %c256_i32 = arith.constant 256 : i32
    %5 = arith.muli %arg1, %c256_i32 : i32
    %6 = vector.broadcast %5 : i32 to vector<1x256xi32>
    %7 = arith.addi %6, %4 : vector<1x256xi32>
    %c256_i32_5 = arith.constant 256 : i32
    %8 = vector.broadcast %c256_i32_5 : i32 to vector<1x256xi32>
    %9 = arith.cmpi slt, %7, %8 : vector<1x256xi32>
    %cst = arith.constant 0.000000e+00 : f32
    %10 = vector.shape_cast %9 : vector<1x256xi1> to vector<1x256xi1>
    %11 = vector.broadcast %10 : vector<1x256xi1> to vector<4x256xi1>
    %12 = vector.broadcast %cst : f32 to vector<4x256xf32>
    %13 = arith.select %11, %1, %12 : vector<4x256xi1>, vector<4x256xf32>
    %cst_6 = arith.constant dense<0xFF800000> : vector<256xf32>
    %14 = vector.multi_reduction <maximumf>, %13, %cst_6 [0] : vector<4x256xf32> to vector<256xf32>
    %15 = vector.shape_cast %14 : vector<256xf32> to vector<1x256xf32>
    %16 = vector.broadcast %15 : vector<1x256xf32> to vector<4x256xf32>
    %17 = arith.subf %13, %16 : vector<4x256xf32>
    %18 = math.exp %17 : vector<4x256xf32>
    %cst_7 = arith.constant dense<0.000000e+00> : vector<256xf32>
    %19 = vector.multi_reduction <add>, %18, %cst_7 [0] : vector<4x256xf32> to vector<256xf32>
    %20 = vector.shape_cast %19 : vector<256xf32> to vector<1x256xf32>
    %21 = tpu.iota {dimensions = array<i32: 0>} : vector<4x256xi32>
    %22 = vector.broadcast %3 : vector<1x256xi32> to vector<4x256xi32>
    %23 = arith.cmpi eq, %21, %22 : vector<4x256xi32>
    %24 = arith.extui %23 : vector<4x256xi1> to vector<4x256xi32>
    %25 = arith.sitofp %24 : vector<4x256xi32> to vector<4x256xf32>
    %26 = arith.mulf %17, %25 : vector<4x256xf32>
    %cst_8 = arith.constant dense<0.000000e+00> : vector<256xf32>
    %27 = vector.multi_reduction <add>, %26, %cst_8 [0] : vector<4x256xf32> to vector<256xf32>
    %28 = vector.shape_cast %27 : vector<256xf32> to vector<1x256xf32>
    %29 = math.log %20 : vector<1x256xf32>
    %30 = arith.subf %28, %29 : vector<1x256xf32>
    %31 = math.exp %30 : vector<1x256xf32>
    %cst_9 = arith.constant 1.000000e+00 : f32
    %32 = vector.broadcast %cst_9 : f32 to vector<1x256xf32>
    %33 = arith.subf %32, %31 : vector<1x256xf32>
    %34 = arith.mulf %33, %33 : vector<1x256xf32>
    %35 = arith.mulf %34, %30 : vector<1x256xf32>
    %cst_10 = arith.constant 0.000000e+00 : f32
    %36 = vector.broadcast %cst_10 : f32 to vector<1x256xf32>
    %37 = arith.subf %36, %35 : vector<1x256xf32>
    %cst_11 = arith.constant 0.000000e+00 : f32
    %38 = vector.broadcast %cst_11 : f32 to vector<1x256xf32>
    %39 = arith.select %9, %37, %38 : vector<1x256xi1>, vector<1x256xf32>
    %40 = vector.shape_cast %39 : vector<1x256xf32> to vector<2x128xf32>
    %cst_12 = arith.constant dense<0.000000e+00> : vector<128xf32>
    %41 = vector.multi_reduction <add>, %40, %cst_12 [0] : vector<2x128xf32> to vector<128xf32>
    %42 = vector.shape_cast %41 : vector<128xf32> to vector<1x1x128xf32>
    %c0_13 = arith.constant 0 : index
    %c0_14 = arith.constant 0 : index
    %c0_15 = arith.constant 0 : index
    %43 = vector.load %arg4[%c0_13, %c0_14, %c0_15] : memref<1x1x128xf32, #tpu.memory_space<vmem>>, vector<1x1x128xf32>
    tpu.vector_store %arg4[%c0_13, %c0_14, %c0_15], %42 {strides = array<i32>} : memref<1x1x128xf32, #tpu.memory_space<vmem>>, vector<1x1x128xf32>,
    return
  }
  func.func @transform_0(%arg0: i32, %arg1: i32) -> (i32, i32, i32) {
    %c0_i32 = arith.constant 0 : i32
    %c0_i32_0 = arith.constant 0 : i32
    return %arg0, %c0_i32, %arg1 : i32, i32, i32
  }
  func.func @transform_1(%arg0: i32, %arg1: i32) -> (i32, i32, i32) {
    %c0_i32 = arith.constant 0 : i32
    %c0_i32_0 = arith.constant 0 : i32
    return %arg0, %c0_i32, %arg1 : i32, i32, i32
  }
  func.func @transform_2(%arg0: i32, %arg1: i32) -> (i32, i32, i32) {
    %c0_i32 = arith.constant 0 : i32
    %c0_i32_0 = arith.constant 0 : i32
    return %arg0, %arg1, %c0_i32 : i32, i32, i32
  }
}

</mosaic_0001>

<bundles_post_ra>
// kernel: tpu_custom_call.1
= control target key start
LH: loop header
LB: loop body
LE: loop exit
PB: predicated region body
PF: predicated region fallthrough
CT: control target
= control target key end

     0   :  { %7 = vsyncpa [#allocation3], 0  ;;  %s965_s0 = inlined_call_operand.hbm [shape: f32[2,4,256], index: 0, kind: input, shape index: {}]   ;;  %s966_s1 = inlined_call_operand.hbm [shape: s32[2,1,256], index: 1, kind: input, shape index: {}]   ;;  %s967_s2 = inlined_call_operand.hbm [shape: f32[2,1,128], index: 2, kind: output, shape index: {}]  }
   0x1   :  { %9 = vsyncpa [#allocation3 + $0x1], 0 }
   0x2   :  { %10 = vsyncpa [#allocation6], 0 }
   0x3   :  { %12 = vsyncpa [#allocation6 + $0x1], 0 }
   0x4   :  { %13 = vsyncpa [#allocation4], 0 }
   0x5   :  { %15 = vsyncpa [#allocation4 + $0x1], 0  ;;  %s736_s9 = smov 0   ;;  %s738_s10 = smov 0  }
   0x6   :  { %s740_s11 = smov 0   ;;  %s742_s12 = smov 0  }
   0x7   :  { %s744_s13 = smov 0   ;;  %s746_s14 = smov 0  }
   0x8 LB: > { %s466_s15 = sadd.s32 4294967295, %s714_s14   ;;  %s467_s16 = sadd.s32 4294967294, %s714_s14   ;;  %s714_s14 = sphi %s746_s14, %s21_s14   ;;  %s710_s13 = sphi %s744_s13, %s987_s13   ;;  %s706_s12 = sphi %s742_s12, %s986_s12   ;;  %s702_s11 = sphi %s740_s11, %s985_s11   ;;  %s698_s10 = sphi %s738_s10, %s984_s10   ;;  %s694_s9 = sphi %s736_s9, %s983_s9  }
   0x9   : > { %s33_s17 = sadd.s32 1, %s710_s13  ;;  %s42_s18 = sadd.s32 1, %s702_s11 }
   0xa   : > { %p35_p0 = scmp.ge.s32.totalorder %s33_s17, 2  ;;  %p49_p1 = scmp.ne.s32.totalorder %s702_s11, %s698_s10 }
   0xb   : > { %p50_p2 = scmp.eq.s32.totalorder %s714_s14, 0  ;;  %p55_p3 = scmp.ne.s32.totalorder %s698_s10, %s694_s9 }
   0xc   : > { %s989_s17 = smov (%p35_p0, %s33_s17), 0  ;;  %p56_p5 = scmp.eq.s32.totalorder %s466_s15, 0 }
   0xd   : > { %p777_p4 = por %p50_p2, %p49_p1  ;;  %s37_s20 = ssub.s32 %s710_s13, %s989_s17 }
   0xe   : > { %p109_p6 = scmp.eq.s32.totalorder %s466_s15, 1  ;;  %p40_p7 = scmp.eq.s32.totalorder %s37_s20, 0 }
   0xf   : > { %p783_p8 = por %p56_p5, %p55_p3  ;;  %p115_p10 = scmp.eq.s32.totalorder %s467_s16, 1 }
  0x10   : > { %p787_p9 = por %p109_p6, %p49_p1  ;;  %p503_p13 = scmp.lt.s32.totalorder %s714_s14, 2 }
  0x11   : > { %s971_s21 = scalar_select %p783_p8, 1, 0 }
  0x12   : > { %s972_s22 = scalar_select %p787_p9, 1, 0 }
  0x13   : > { %s792_s23 = scalar_select %p40_p7, %s702_s11, %s42_s18  }
  0x14   : > { %p794_p11 = por %p115_p10, %p55_p3  ;;  %s801_s25 = sand.u32 1, %s702_s11  }
  0x15   : > { %s470_s26 = sshll.u32 %s801_s25, 3  ;;  %s484_s27 = sshll.u32 %s710_s13, 7 }
  0x16   : > { %s973_s24 = scalar_select %p794_p11, 1, 0 }
  0x17   : > { %s808_s30 = scalar_lea.hbm %s965_s0, %s484_s27  ;;  %s139_s3 = scalar_lea.vmem [#allocation2], %s470_s26 }
  0x18   : > { %s149_s4 = sshll.u32 %s139_s3, 4  ;;  %p814_p0 = pnand %p503_p13, %p777_p4  ;;  %s810_s4 = int_to_ptr.vmem [resolvable:$true] %s149_s4 }
  0x19   : > { %s136_s6 = scalar_lea.sflag [#allocation3], %s801_s25  ;;  %s568_s7 = scalar_lea.hbm %s808_s30, 128 }
  0x1a   : > { %p569_p3 = scmp.ne.s32.totalorder %s808_s30, %s568_s7  ;;  %p570_p5 = pneg %p814_p0 }
  0x1b   : > { %s573_s16 = scalar_lea.hbm %s965_s0, 256  ;;  %p574_p4 = scmp.lt.u32.totalorder %s808_s30, %s965_s0 }
  0x1c   : > { %p571_p6 = pnand %p570_p5, %p569_p3  ;;  %p575_p10 = scmp.lt.u32.totalorder %s573_s16, %s568_s7 }
  0x1d   : > { %p577_p12 = scmp.lt.u32.totalorder %s568_s7, %s808_s30 }
  0x1e   : > { %p572_p7 = pneg %p571_p6  ;;  %p576_p13 = por %p575_p10, %p574_p4 }
  0x20   : > { %p578_p1 = por %p577_p12, %p576_p13 }
  0x22   : > { %p579_p2 = pnand %p578_p1, %p572_p7 }
  0x24   : > { %582 = shalt.err (!%p579_p2)
}
  0x25   : > { %s583_s20 = scalar_lea.vmem %s810_s4, 128  ;;  %s716_s26 = smov [#allocation2]  }
  0x26   : > { %p584_p3 = scmp.ne.s32.totalorder %s810_s4, %s583_s20  ;;  %s588_s27 = sshll.u32 %s716_s26, 4  ;;  %s589_s27 = int_to_ptr.vmem [resolvable:$false] %s588_s27 }
  0x27   : > { %s590_s28 = scalar_lea.vmem %s589_s27, 256  ;;  %p591_p9 = scmp.lt.s32.totalorder %s810_s4, %s589_s27 }
  0x28   : > { %p586_p6 = pnand %p584_p3, %p570_p5  ;;  %p592_p4 = scmp.lt.s32.totalorder %s590_s28, %s583_s20 }
  0x2a   : > { %p587_p11 = pneg %p586_p6  ;;  %p593_p10 = por %p592_p4, %p591_p9 }
  0x2c   : > { %p594_p12 = pnand %p593_p10, %p587_p11 }
  0x2e   : > { %597 = shalt.err (!%p594_p12)
}
  0x2f   : > { %495 = dma.hbm_to_vmem [thread:$0]  (!%p814_p0), %s808_s30, 128, %s810_s4, %s136_s6  }
  0x30   : > { %p975_p1 = scmp.lt.s32.totalorder %s714_s14, 3  ;;  %p976_p2 = scmp.ge.s32.totalorder %s714_s14, 1 }
  0x31   : > { %s473_s3 = sshll.u32 %s801_s25, 1  ;;  %s485_s7 = sshll.u32 %s710_s13, 5 }
  0x32   : > { %p850_p7 = pnand %p976_p2, %p975_p1  ;;  %s859_s16 = scalar_lea.hbm %s966_s1, %s485_s7 }
  0x33   : > { %s160_s18 = scalar_lea.vmem [#allocation5], %s473_s3  ;;  %s157_s30 = scalar_lea.sflag [#allocation6], %s801_s25 }
  0x34   : > { %s977_s29 = scalar_select %p850_p7, 1, 0 }
  0x35   : > { %s170_s19 = sshll.u32 %s160_s18, 4  ;;  %s598_s4 = scalar_lea.hbm %s859_s16, 32  ;;  %s171_s19 = int_to_ptr.vmem [resolvable:$true] %s170_s19 }
  0x36   : > { %p599_p9 = scmp.ne.s32.totalorder %s859_s16, %s598_s4  ;;  %s603_s26 = scalar_lea.hbm %s966_s1, 64 }
  0x37   : > { %p604_p3 = scmp.lt.u32.totalorder %s859_s16, %s966_s1  ;;  %p605_p6 = scmp.lt.u32.totalorder %s603_s26, %s598_s4 }
  0x38   : > { %p601_p11 = pnand %p599_p9, %p570_p5  ;;  %p607_p10 = scmp.lt.u32.totalorder %s598_s4, %s859_s16 }
  0x39   : > { %p606_p4 = por %p605_p6, %p604_p3 }
  0x3a   : > { %p602_p13 = pneg %p601_p11 }
  0x3b   : > { %p608_p12 = por %p607_p10, %p606_p4 }
  0x3d   : > { %p609_p1 = pnand %p608_p12, %p602_p13 }
  0x3f   : > { %612 = shalt.err (!%p609_p1)
}
  0x40   : > { %s613_s25 = scalar_lea.vmem %s171_s19, 32  ;;  %s717_s3 = smov [#allocation5]  }
  0x41   : > { %p614_p2 = scmp.ne.s32.totalorder %s171_s19, %s613_s25  ;;  %s618_s7 = sshll.u32 %s717_s3, 4  ;;  %s619_s7 = int_to_ptr.vmem [resolvable:$false] %s618_s7 }
  0x42   : > { %s620_s8 = scalar_lea.vmem %s619_s7, 64  ;;  %p621_p8 = scmp.lt.s32.totalorder %s171_s19, %s619_s7 }
  0x43   : > { %p616_p9 = pnand %p614_p2, %p570_p5  ;;  %p622_p7 = scmp.lt.s32.totalorder %s620_s8, %s613_s25 }
  0x45   : > { %p617_p11 = pneg %p616_p9  ;;  %p623_p3 = por %p622_p7, %p621_p8 }
  0x47   : > { %p624_p6 = pnand %p623_p3, %p617_p11 }
  0x49   : > { %627 = shalt.err (!%p624_p6)
}
  0x4a   : > { %498 = dma.hbm_to_vmem [thread:$0]  (!%p814_p0), %s859_s16, 32, %s171_s19, %s157_s30  }
  0x4b   : > { %p978_p13 = scmp.ne.s32.totalorder %s977_s29, 0 }
  0x4c   : > { %s884_s15 = sand.u32 (!%p978_p13), 1, %s698_s10   ;;  %p979_p5 = scmp.ne.s32.totalorder (!%p978_p13), %s971_s21, 0 }
  0x4d   : > { %179 = sbr.rel (%p978_p13) target bundleno = 199 (0xc7), region = 28  ;;  %s477_s18 = sshll.u32 (!%p978_p13), %s884_s15, 3 }
  0x4e   : > { %s182_s4 = scalar_lea.sflag (!%p978_p13), [#allocation3], %s884_s15  ;;  %s185_s6 = scalar_lea.vmem (!%p978_p13), [#allocation2], %s477_s18 }
  0x54   : > { %681 = dma.done.wait (%p979_p5), %s182_s4, 128  }
  0x55   : > { %683 = vsyncadd (%p979_p5), %s182_s4, 4294967168  ;;  %s478_s5 = sshll.u32 %s884_s15, 1  ;;  %s191_s29 = scalar_lea.sflag [#allocation6], %s884_s15 }
  0x56   : > { %s194_s16 = scalar_lea.vmem [#allocation5], %s478_s5 }
  0x57   : > { %685 = dma.done.wait (%p979_p5), %s191_s29, 32  }
  0x58   : > { %687 = vsyncadd (%p979_p5), %s191_s29, 4294967264  ;;  %vm241_vm0 = vcmask 1043456   ;;  %v221_v0 = vld [vmem:[%s185_s6] sm:$0xff]  ;;  %v276_v4 = vlaneseq  ;;  %v222_v16 = vld [vmem:[%s194_s16] sm:$0x3]  ;;  %v718_v27 = vmov 0.0  }
  0x59   : > { %v237_v1 = vcombine.high %v221_v0, %v221_v0  ;;  %v242_v2 = vsel %vm241_vm0, %v221_v0, -inf  ;;  %vm339_vm3 = vcmask 1041408   ;;  %s218_s21 = scalar_lea.vmem [#allocation7], %s884_s15  ;;  %s481_s30 = sshll.u32 %s706_s12, 4 }
  0x5a   : > { %v243_v3 = vrot.slane %v242_v2, 4  ;;  %v900_v10 = vshrl.u32 %v276_v4, 7  ;;  %s362_s19 = sshll.u32 %s218_s21, 4  ;;  %s918_s27 = scalar_lea.hbm %s967_s2, %s481_s30  ;;  %s913_s19 = int_to_ptr.vmem [resolvable:$true] %s362_s19 }
  0x5b   : > { %v249_v5 = vsel %vm241_vm0, %v237_v1, -inf  ;;  %s349_s28 = scalar_lea.sflag [#allocation4], %s884_s15  ;;  %s628_s25 = scalar_lea.vmem %s913_s19, 16 }
  0x5c   : > { %v244_v6 = vmax.f32 %v242_v2, %v243_v3  ;;  %v250_v7 = vrot.slane %v249_v5, 4  ;;  %v280_v15 = vsub.s32 0, %v900_v10  ;;  %v284_v19 = vsub.s32 1, %v900_v10  ;;  %p629_p8 = scmp.ne.s32.totalorder %s913_s19, %s628_s25  ;;  %p980_p0 = scmp.ne.s32.totalorder %s972_s22, 0 }
  0x5d   : > { %s720_s12 = smov [#allocation7]  }
  0x5e   : > { %v245_v8 = vrot.slane %v244_v6, 2  ;;  %v251_v9 = vmax.f32 %v249_v5, %v250_v7  ;;  %v281_v22 = vrot.slane %v222_v16, %v280_v15  ;;  %v285_v25 = vrot.slane %v222_v16, %v284_v19  ;;  %p630_p7 = pnand %p629_p8, %p980_p0  ;;  %s632_s3 = sshll.u32 %s720_s12, 4  ;;  %s633_s3 = int_to_ptr.vmem [resolvable:$false] %s632_s3 }
  0x5f   : > { %s634_s7 = scalar_lea.vmem %s633_s3, 32  ;;  %p635_p10 = scmp.lt.s32.totalorder %s913_s19, %s633_s3 }
  0x60   : > { %v246_v11 = vmax.f32 %v244_v6, %v245_v8  ;;  %v252_v12 = vrot.slane %v251_v9, 2  ;;  %vm286_vm1 = vcmp.eq.s32.totalorder %v900_v10, %v281_v22  ;;  %vm287_vm2 = vcmp.eq.s32.totalorder %v900_v10, %v285_v25  ;;  %p631_p4 = pneg %p630_p7  ;;  %p636_p12 = scmp.lt.s32.totalorder %s634_s7, %s628_s25 }
  0x61   : > { %v479_v28 = vsel %vm286_vm1, 1.0, %v718_v27  ;;  %v480_v29 = vsel %vm287_vm2, 1.0, %v718_v27  ;;  %v719_v8 = vmov 1935823168  }
  0x62   : > { %v247_v13 = vrot.slane %v246_v11, 1  ;;  %v253_v14 = vmax.f32 %v251_v9, %v252_v12  ;;  %v333_v9 = vunpack.c.l.s4 %v719_v8  ;;  %p637_p1 = por %p636_p12, %p635_p10 }
  0x64   : > { %v248_v17 = vmax.f32 %v246_v11, %v247_v13  ;;  %v254_v18 = vrot.slane %v253_v14, 1  ;;  %v334_v16 = vunpack.c.0.s8 %v333_v9  ;;  %p638_p2 = pnand %p637_p1, %p631_p4 }
  0x66   : > { %v255_v20 = vmax.f32 %v253_v14, %v254_v18  ;;  %v256_v21 = vsub.f32 %v221_v0, %v248_v17 }
  0x68   : > { %v257_v23 = vsub.f32 %v237_v1, %v255_v20  ;;  %v258_v24 = vmul.f32 1.442695, %v256_v21  ;;  %v292_v30 = vmul.f32 %v479_v28, %v256_v21  ;;  %v337_v20 = vsub.s32 %v334_v16, %v900_v10 }
  0x6a   : > { %556 = vpow2.f32 %v258_v24  ;;  %v260_v26 = vmul.f32 1.442695, %v257_v23  ;;  %v293_v31 = vmul.f32 %v480_v29, %v257_v23  ;;  %v294_v33 = vsel %vm241_vm0, %v292_v30, 0.0 }
  0x6b   : > { %v295_v39 = vrot.slane %v294_v33, 4 }
  0x6c   : > { %558 = vpow2.f32 %v260_v26  ;;  %v301_v37 = vsel %vm241_vm0, %v293_v31, 0.0 }
  0x6d   : > { %v302_v42 = vrot.slane %v301_v37, 4  ;;  %v296_v45 = vadd.f32 %v295_v39, %v294_v33 }
  0x6f   : > { %v303_v48 = vadd.f32 %v302_v42, %v301_v37  ;;  %v297_v51 = vrot.slane %v296_v45, 2 }
  0x71   : > { %v304_v54 = vrot.slane %v303_v48, 2  ;;  %v298_v56 = vadd.f32 %v297_v51, %v296_v45 }
  0x73   : > { %v305_v57 = vadd.f32 %v304_v54, %v303_v48  ;;  %v299_v58 = vrot.slane %v298_v56, 1 }
  0x74   : > { %v557_v32 = vpop.eup %556 }
  0x75   : > { %v262_v34 = vsel %vm241_vm0, %v557_v32, 0.0  ;;  %v306_v59 = vrot.slane %v305_v57, 1  ;;  %v300_v60 = vadd.f32 %v299_v58, %v298_v56 }
  0x76   : > { %v559_v35 = vpop.eup %558  ;;  %v263_v36 = vrot.slane %v262_v34, 4 }
  0x77   : > { %v269_v38 = vsel %vm241_vm0, %v559_v35, 0.0  ;;  %v307_v62 = vadd.f32 %v306_v59, %v305_v57 }
  0x78   : > { %v264_v40 = vadd.f32 %v263_v36, %v262_v34  ;;  %v270_v41 = vrot.slane %v269_v38, 4 }
  0x7a   : > { %v265_v43 = vrot.slane %v264_v40, 2  ;;  %v271_v44 = vadd.f32 %v270_v41, %v269_v38 }
  0x7c   : > { %v266_v46 = vadd.f32 %v265_v43, %v264_v40  ;;  %v272_v47 = vrot.slane %v271_v44, 2 }
  0x7e   : > { %v267_v49 = vrot.slane %v266_v46, 1  ;;  %v273_v50 = vadd.f32 %v272_v47, %v271_v44 }
  0x80   : > { %v268_v52 = vadd.f32 %v267_v49, %v266_v46  ;;  %v274_v53 = vrot.slane %v273_v50, 1 }
  0x82   : > { %v275_v55 = vadd.f32 %v274_v53, %v273_v50  ;;  %560 = vlog2.f32 %v268_v52 }
  0x84   : > { %562 = vlog2.f32 %v275_v55 }
  0x8c   : > { %v561_v61 = vpop.eup %560 }
  0x8d   : > { %v309_v63 = vmul.f32 0.6931472, %v561_v61 }
  0x8e   : > { %v563_v0 = vpop.eup %562 }
  0x8f   : > { %v311_v1 = vmul.f32 0.6931472, %v563_v0  ;;  %v312_v2 = vsub.f32 %v300_v60, %v309_v63 }
  0x91   : > { %v313_v3 = vsub.f32 %v307_v62, %v311_v1  ;;  %v314_v4 = vmul.f32 1.442695, %v312_v2 }
  0x93   : > { %564 = vpow2.f32 %v314_v4  ;;  %v316_v5 = vmul.f32 1.442695, %v313_v3 }
  0x95   : > { %566 = vpow2.f32 %v316_v5 }
  0x9d   : > { %v565_v6 = vpop.eup %564 }
  0x9e   : > { %v318_v7 = vsub.f32 1.0, %v565_v6 }
  0x9f   : > { %v567_v11 = vpop.eup %566 }
  0xa0   : > { %v319_v12 = vsub.f32 1.0, %v567_v11  ;;  %v320_v13 = vmul.f32 %v318_v7, %v318_v7 }
  0xa2   : > { %v321_v14 = vmul.f32 %v319_v12, %v319_v12  ;;  %v322_v15 = vmul.f32 %v320_v13, %v312_v2 }
  0xa4   : > { %v323_v17 = vmul.f32 %v321_v14, %v313_v3  ;;  %v324_v18 = vsub.f32 0.0, %v322_v15 }
  0xa6   : > { %v325_v19 = vsub.f32 0.0, %v323_v17 }
  0xa8   : > { %v330_v21 = vcombine.low %v324_v18, %v325_v19 }
  0xaa   : > { %v338_v22 = vrot.slane %v330_v21, %v337_v20 }
  0xac   : > { %v340_v23 = vsel %vm339_vm3, %v338_v22, 0.0 }
  0xad   : > { %v341_v24 = vrot.slane %v340_v23, 4 }
  0xaf   : > { %v342_v25 = vadd.f32 %v341_v24, %v340_v23 }
  0xb1   : > { %v343_v26 = vrot.slane %v342_v25, 2 }
  0xb3   : > { %v344_v27 = vadd.f32 %v343_v26, %v342_v25 }
  0xb5   : > { %v345_v28 = vrot.slane %v344_v27, 1 }
  0xb7   : > { %v346_v29 = vadd.f32 %v345_v28, %v344_v27 }
  0xb9   : > { %347 = vst [vmem:[%s218_s21] sm:$0x1] %v346_v29 }
  0xba   : > { %641 = shalt.err (!%p638_p2)
}
  0xbb   : > { %s642_s8 = scalar_lea.hbm %s918_s27, 16  ;;  %s646_s4 = scalar_lea.hbm %s967_s2, 32 }
  0xbc   : > { %p643_p9 = scmp.ne.s32.totalorder %s918_s27, %s642_s8  ;;  %p647_p6 = scmp.lt.u32.totalorder %s918_s27, %s967_s2 }
  0xbd   : > { %p648_p13 = scmp.lt.u32.totalorder %s646_s4, %s642_s8  ;;  %p650_p8 = scmp.lt.u32.totalorder %s642_s8, %s918_s27 }
  0xbe   : > { %p644_p11 = pnand %p643_p9, %p980_p0 }
  0xbf   : > { %p649_p5 = por %p648_p13, %p647_p6 }
  0xc0   : > { %p645_p3 = pneg %p644_p11 }
  0xc1   : > { %p651_p7 = por %p650_p8, %p649_p5 }
  0xc3   : > { %p652_p4 = pnand %p651_p7, %p645_p3 }
  0xc5   : > { %655 = shalt.err (!%p652_p4)
}
  0xc6   : > { %490 = dma.vmem_to_hbm [thread:$0]  (%p980_p0), %s913_s19, 16, %s918_s27, %s349_s28  }
  0xc7 PF: > { %s374_s29 = sand.u32 1, %s694_s9   ;;  %p981_p10 = scmp.ne.s32.totalorder %s973_s24, 0 }
  0xc8   : > { %p982_p12 = scmp.ge.s32.totalorder %s714_s14, 2  ;;  %s375_s16 = scalar_lea.sflag [#allocation4], %s374_s29 }
  0xca   : > { %p500_p1 = pnand %p982_p12, %p981_p10 }
  0xcc   : > { %689 = dma.done.wait (!%p500_p1), %s375_s16, 16  }
  0xcd   : > { %691 = vsyncadd (!%p500_p1), %s375_s16, 4294967280  ;;  %s21_s14 = sadd.s32 1, %s714_s14   ;;  %s983_s9 = smov %s698_s10 }
  0xce   : > { %p18_p2 = scmp.ge.s32.totalorder %s21_s14, 4   ;;  %s984_s10 = smov %s702_s11 }
  0xcf   : > { %s985_s11 = smov %s792_s23  ;;  %s986_s12 = smov %s710_s13 }
  0xd0   : > { %s987_s13 = smov %s989_s17  ;;  %20 = sbr.rel (!%p18_p2) target bundleno = 8 (0x8), region = 86 }
  0xd7   :  { %379 = vsyncpa [#allocation3], 1 }
  0xd8   :  { %381 = vsyncpa [#allocation3 + $0x1], 1 }
  0xd9   :  { %382 = vsyncpa [#allocation6], 1 }
  0xda   :  { %384 = vsyncpa [#allocation6 + $0x1], 1 }
  0xdb   :  { %385 = vsyncpa [#allocation4], 1 }
  0xdc   :  { %387 = vsyncpa [#allocation4 + $0x1], 1 }

</bundles_post_ra>
